<compile_context>
chip_gen: v5e
topology: v5e:2x2
jax: 0.10.0
libtpu: 0.0.40
codegen_flags: <defaults>
</compile_context>

<pallas_src>
import jax
import jax.numpy as jnp
from jax.experimental import pallas as pl
from jax.experimental.pallas import tpu as pltpu

HID_SIZE = 32
N_SLOTS = 2
MAX_B_TILE = 4096  # batch rows (lanes) per grid step


def _round_up(a, m):
    return ((a + m - 1) // m) * m


def actor_kernel(xT_ref, w1_ref, b1_ref, w2_ref, b2_ref, o_ref):
    # xT : (ob_len, Bt)   batch on the lane axis
    # w1 : (hid, ob_len)  b1 : (hid, 1)       (PyTorch layout)
    # w2 : (n_slots, hid) b2 : (n_slots, 1)
    # o  : (n_slots, Bt)  batch on the lane axis

    # --- Linear 1 + ReLU (MXU matmul + VPU elementwise) ---
    h = jnp.dot(w1_ref[...], xT_ref[...], preferred_element_type=jnp.float32)
    h = jnp.maximum(h + b1_ref[...], 0.0)                 # (hid, Bt)

    # --- Linear 2 ---
    logits = jnp.dot(w2_ref[...], h, preferred_element_type=jnp.float32)
    logits = logits + b2_ref[...]                         # (2, Bt)

    # --- 2-class softmax, closed form (numerically stable sigmoid) ---
    # p0 = sigmoid(l0 - l1), p1 = 1 - p0.  One EUP exp, no XLU reductions.
    d = logits[0:1, :] - logits[1:2, :]                   # (1, Bt)
    e = jnp.exp(-jnp.abs(d))                              # EUP
    inv = 1.0 / (1.0 + e)
    p0 = jnp.where(d >= 0.0, inv, 1.0 - inv)
    p1 = 1.0 - p0

    # Lane-dense stores (full Bt lanes per store).
    o_ref[0:1, :] = p0.astype(o_ref.dtype)
    o_ref[1:2, :] = p1.astype(o_ref.dtype)


def actor_forward(x, w1, b1, w2, b2, *, max_b_tile=MAX_B_TILE):
    """x: (B, ob_len) f32.
    w1: (hid, ob_len), b1: (hid,), w2: (n_slots, hid), b2: (n_slots,)
    -- same layout as the PyTorch nn.Linear parameters.
    Returns (B, n_slots) f32 softmax probabilities."""
    B, ob_len = x.shape
    hid = w1.shape[0]
    n_slots = w2.shape[0]

    # Batch tile: multiple of 128 lanes, capped at max_b_tile.
    b_tile = min(max_b_tile, _round_up(B, 128))
    b_pad = _round_up(B, b_tile)
    grid = (b_pad // b_tile,)

    # Transpose + pad so batch is the (lane-dense) last axis.
    xT = jnp.pad(x, ((0, b_pad - B), (0, 0))).T           # (ob_len, b_pad)
    b1c = b1.reshape(hid, 1)
    b2c = b2.reshape(n_slots, 1)

    out = pl.pallas_call(
        actor_kernel,
        out_shape=jax.ShapeDtypeStruct((n_slots, b_pad), jnp.float32),
        grid_spec=pltpu.PrefetchScalarGridSpec(
            num_scalar_prefetch=0,
            grid=grid,
            in_specs=[
                # x tile marches along the batch/lane axis.
                pl.BlockSpec((ob_len, b_tile), lambda i: (0, i)),
                # Weights/biases: constant index maps -> stay VMEM-resident.
                pl.BlockSpec((hid, ob_len), lambda i: (0, 0)),
                pl.BlockSpec((hid, 1), lambda i: (0, 0)),
                pl.BlockSpec((n_slots, hid), lambda i: (0, 0)),
                pl.BlockSpec((n_slots, 1), lambda i: (0, 0)),
            ],
            out_specs=pl.BlockSpec((n_slots, b_tile), lambda i: (0, i)),
        ),
        compiler_params=pltpu.CompilerParams(
            dimension_semantics=("parallel",),
        ),
    )(xT, w1, b1c, w2, b2c)

    # Strip batch padding and return in the PyTorch (B, n_slots) layout.
    return out[:, :B].T


def init_actor_params(key, ob_len):
    """Deterministic init mirroring PyTorch nn.Linear default:
    U(-1/sqrt(fan_in), 1/sqrt(fan_in)); weights in (out, in) layout."""
    k1, k2, k3, k4 = jax.random.split(key, 4)
    bound1 = 1.0 / jnp.sqrt(jnp.float32(ob_len))
    bound2 = 1.0 / jnp.sqrt(jnp.float32(HID_SIZE))
    w1 = jax.random.uniform(k1, (HID_SIZE, ob_len), jnp.float32, -bound1, bound1)
    b1 = jax.random.uniform(k2, (HID_SIZE,), jnp.float32, -bound1, bound1)
    w2 = jax.random.uniform(k3, (N_SLOTS, HID_SIZE), jnp.float32, -bound2, bound2)
    b2 = jax.random.uniform(k4, (N_SLOTS,), jnp.float32, -bound2, bound2)
    return w1, b1, w2, b2


def actor_reference(x, w1, b1, w2, b2):
    """Plain-JAX reference (PyTorch semantics) for correctness checks."""
    h = jnp.maximum(x @ w1.T + b1, 0.0)
    logits = h @ w2.T + b2
    return jax.nn.softmax(logits, axis=-1)


if __name__ == "__main__":
    key = jax.random.PRNGKey(0)
    k_x, k_p, k_x2 = jax.random.split(key, 3)

    batch = 2
    ob_len = 8  # observation length

    x = jax.random.normal(k_x, (batch, ob_len), dtype=jnp.float32)
    w1, b1, w2, b2 = init_actor_params(k_p, ob_len)

    out = jax.block_until_ready(actor_forward(x, w1, b1, w2, b2))
    ref = actor_reference(x, w1, b1, w2, b2)
    assert out.shape == (batch, N_SLOTS)
    assert jnp.allclose(out, ref, atol=1e-5, rtol=1e-5)
    assert jnp.allclose(jnp.sum(out, axis=-1), 1.0, atol=1e-5)

    # Second check: multi-step grid + batch padding path (small tile to force
    # more than one grid step).
    batch2 = 1000
    x2 = jax.random.normal(k_x2, (batch2, ob_len), dtype=jnp.float32)
    out2 = jax.block_until_ready(actor_forward(x2, w1, b1, w2, b2, max_b_tile=512))
    ref2 = actor_reference(x2, w1, b1, w2, b2)
    assert out2.shape == (batch2, N_SLOTS)
    assert jnp.allclose(out2, ref2, atol=1e-5, rtol=1e-5)
    assert jnp.allclose(jnp.sum(out2, axis=-1), 1.0, atol=1e-5)

    print("KERNEL_OK")
</pallas_src>

<mosaic_0001>
module attributes {stable_mosaic.version = 11 : i64} {
  func.func @actor_kernel(%arg0: i32, %arg1: memref<8x128xf32, #tpu.memory_space<vmem>>, %arg2: memref<32x8xf32, #tpu.memory_space<vmem>>, %arg3: memref<32x1xf32, #tpu.memory_space<vmem>>, %arg4: memref<2x32xf32, #tpu.memory_space<vmem>>, %arg5: memref<2x1xf32, #tpu.memory_space<vmem>>, %arg6: memref<2x128xf32, #tpu.memory_space<vmem>>) attributes {dimension_semantics = [#tpu.dimension_semantics<parallel>], iteration_bounds = array<i64: 1>, scalar_prefetch = 0 : i64, scratch_operands = 0 : i64, tpu.core_type = #tpu.core_type<tc>, window_params = [{transform_indices = @transform_0, window_bounds = array<i64: 8, 128>}, {pipeline_mode = #tpu.pipeline_mode<synchronous>, transform_indices = @transform_1, window_bounds = array<i64: 32, 8>}, {pipeline_mode = #tpu.pipeline_mode<synchronous>, transform_indices = @transform_2, window_bounds = array<i64: 32, 1>}, {pipeline_mode = #tpu.pipeline_mode<synchronous>, transform_indices = @transform_3, window_bounds = array<i64: 2, 32>}, {pipeline_mode = #tpu.pipeline_mode<synchronous>, transform_indices = @transform_4, window_bounds = array<i64: 2, 1>}, {transform_indices = @transform_5, window_bounds = array<i64: 2, 128>}]} {
    %c0 = arith.constant 0 : index
    %c0_0 = arith.constant 0 : index
    %0 = vector.load %arg2[%c0, %c0_0] : memref<32x8xf32, #tpu.memory_space<vmem>>, vector<32x8xf32>
    %c0_1 = arith.constant 0 : index
    %c0_2 = arith.constant 0 : index
    %1 = vector.load %arg1[%c0_1, %c0_2] : memref<8x128xf32, #tpu.memory_space<vmem>>, vector<8x128xf32>
    %cst = arith.constant dense<0.000000e+00> : vector<32x128xf32>
    %2 = tpu.matmul %0, %1, %cst {dimension_numbers = #tpu.dot_dimension_numbers<[1], [0], [0], [1], [0, 0, 1, 1], [], []>} : vector<32x8xf32>, vector<8x128xf32>, vector<32x128xf32> -> vector<32x128xf32>
    %c0_3 = arith.constant 0 : index
    %c0_4 = arith.constant 0 : index
    %3 = vector.load %arg3[%c0_3, %c0_4] : memref<32x1xf32, #tpu.memory_space<vmem>>, vector<32x1xf32>
    %4 = vector.broadcast %3 : vector<32x1xf32> to vector<32x128xf32>
    %5 = arith.addf %2, %4 : vector<32x128xf32>
    %cst_5 = arith.constant 0.000000e+00 : f32
    %6 = vector.broadcast %cst_5 : f32 to vector<32x128xf32>
    %7 = arith.maximumf %5, %6 : vector<32x128xf32>
    %c0_6 = arith.constant 0 : index
    %c0_7 = arith.constant 0 : index
    %8 = vector.load %arg4[%c0_6, %c0_7] : memref<2x32xf32, #tpu.memory_space<vmem>>, vector<2x32xf32>
    %cst_8 = arith.constant dense<0.000000e+00> : vector<2x128xf32>
    %9 = tpu.matmul %8, %7, %cst_8 {dimension_numbers = #tpu.dot_dimension_numbers<[1], [0], [0], [1], [0, 0, 1, 1], [], []>} : vector<2x32xf32>, vector<32x128xf32>, vector<2x128xf32> -> vector<2x128xf32>
    %c0_9 = arith.constant 0 : index
    %c0_10 = arith.constant 0 : index
    %10 = vector.load %arg5[%c0_9, %c0_10] : memref<2x1xf32, #tpu.memory_space<vmem>>, vector<2x1xf32>
    %11 = vector.broadcast %10 : vector<2x1xf32> to vector<2x128xf32>
    %12 = arith.addf %9, %11 : vector<2x128xf32>
    %13 = vector.extract_strided_slice %12 {offsets = [0, 0], sizes = [1, 128], strides = [1, 1]} : vector<2x128xf32> to vector<1x128xf32>
    %14 = vector.extract_strided_slice %12 {offsets = [1, 0], sizes = [1, 128], strides = [1, 1]} : vector<2x128xf32> to vector<1x128xf32>
    %15 = arith.subf %13, %14 : vector<1x128xf32>
    %16 = math.absf %15 : vector<1x128xf32>
    %cst_11 = arith.constant 0.000000e+00 : f32
    %17 = vector.broadcast %cst_11 : f32 to vector<1x128xf32>
    %18 = arith.subf %17, %16 : vector<1x128xf32>
    %19 = math.exp %18 : vector<1x128xf32>
    %cst_12 = arith.constant 1.000000e+00 : f32
    %20 = vector.broadcast %cst_12 : f32 to vector<1x128xf32>
    %21 = arith.addf %20, %19 : vector<1x128xf32>
    %cst_13 = arith.constant 1.000000e+00 : f32
    %22 = vector.broadcast %cst_13 : f32 to vector<1x128xf32>
    %23 = arith.divf %22, %21 : vector<1x128xf32>
    %cst_14 = arith.constant 0.000000e+00 : f32
    %24 = vector.broadcast %cst_14 : f32 to vector<1x128xf32>
    %25 = arith.cmpf oge, %15, %24 : vector<1x128xf32>
    %cst_15 = arith.constant 1.000000e+00 : f32
    %26 = vector.broadcast %cst_15 : f32 to vector<1x128xf32>
    %27 = arith.subf %26, %23 : vector<1x128xf32>
    %28 = arith.select %25, %23, %27 : vector<1x128xi1>, vector<1x128xf32>
    %cst_16 = arith.constant 1.000000e+00 : f32
    %29 = vector.broadcast %cst_16 : f32 to vector<1x128xf32>
    %30 = arith.subf %29, %28 : vector<1x128xf32>
    %c0_17 = arith.constant 0 : index
    %c0_18 = arith.constant 0 : index
    %31 = vector.load %arg6[%c0_17, %c0_18] : memref<2x128xf32, #tpu.memory_space<vmem>>, vector<1x128xf32>
    tpu.vector_store %arg6[%c0_17, %c0_18], %28 {strides = array<i32>} : memref<2x128xf32, #tpu.memory_space<vmem>>, vector<1x128xf32>,
    %c1 = arith.constant 1 : index
    %c0_19 = arith.constant 0 : index
    %32 = vector.load %arg6[%c1, %c0_19] : memref<2x128xf32, #tpu.memory_space<vmem>>, vector<1x128xf32>
    tpu.vector_store %arg6[%c1, %c0_19], %30 {strides = array<i32>} : memref<2x128xf32, #tpu.memory_space<vmem>>, vector<1x128xf32>,
    return
  }
  func.func @transform_0(%arg0: i32) -> (i32, i32) {
    %c0_i32 = arith.constant 0 : i32
    %c0_i32_0 = arith.constant 0 : i32
    return %c0_i32, %arg0 : i32, i32
  }
  func.func @transform_1(%arg0: i32) -> (i32, i32) {
    %c0_i32 = arith.constant 0 : i32
    %c0_i32_0 = arith.constant 0 : i32
    %c0_i32_1 = arith.constant 0 : i32
    return %c0_i32, %c0_i32_0 : i32, i32
  }
  func.func @transform_2(%arg0: i32) -> (i32, i32) {
    %c0_i32 = arith.constant 0 : i32
    %c0_i32_0 = arith.constant 0 : i32
    %c0_i32_1 = arith.constant 0 : i32
    return %c0_i32, %c0_i32_0 : i32, i32
  }
  func.func @transform_3(%arg0: i32) -> (i32, i32) {
    %c0_i32 = arith.constant 0 : i32
    %c0_i32_0 = arith.constant 0 : i32
    %c0_i32_1 = arith.constant 0 : i32
    return %c0_i32, %c0_i32_0 : i32, i32
  }
  func.func @transform_4(%arg0: i32) -> (i32, i32) {
    %c0_i32 = arith.constant 0 : i32
    %c0_i32_0 = arith.constant 0 : i32
    %c0_i32_1 = arith.constant 0 : i32
    return %c0_i32, %c0_i32_0 : i32, i32
  }
  func.func @transform_5(%arg0: i32) -> (i32, i32) {
    %c0_i32 = arith.constant 0 : i32
    %c0_i32_0 = arith.constant 0 : i32
    return %c0_i32, %arg0 : i32, i32
  }
}

</mosaic_0001>

<bundles_post_ra>
// kernel: tpu_custom_call.1
= control target key start
LH: loop header
LB: loop body
LE: loop exit
PB: predicated region body
PF: predicated region fallthrough
CT: control target
= control target key end

     0   :  { %vm50_vm0 = vcmask 64512   ;;  %v215_v5 = vmov 0   ;;  %s287_s0 = inlined_call_operand.vmem [shape: f32[8,128], index: 0, kind: input, shape index: {}]   ;;  %s288_s1 = inlined_call_operand.vmem [shape: f32[32,8], index: 1, kind: input, shape index: {}]   ;;  %s289_s2 = inlined_call_operand.vmem [shape: f32[32,1], index: 2, kind: input, shape index: {}]   ;;  %s290_s3 = inlined_call_operand.vmem [shape: f32[2,32], index: 3, kind: input, shape index: {}]   ;;  %s291_s4 = inlined_call_operand.vmem [shape: f32[2,1], index: 4, kind: input, shape index: {}]   ;;  %s292_s5 = inlined_call_operand.hbm [shape: f32[2,128], index: 5, kind: output, shape index: {}]  }
   0x1   :  { %v25_v0 = vld [vmem:[%s287_s0] sm:$0xff]  ;;  %v22_v1 = vld [vmem:[%s288_s1 + $0x8] sm:$0xff]  ;;  %v24_v2 = vld [vmem:[%s288_s1 + $0x18] sm:$0xff]  ;;  %182 = vset.pattern.permute.xlu0 %v215_v5 }
   0x2   :  { %178 = vmatpush.msra.mxu2 %v25_v0  ;;  %179 = vmatpush.msra.mxu3 %v25_v0  ;;  %v29_v3 = vld [vmem:[%s289_s2 + $0x18] sm:$0xff]  ;;  %v21_v4 = vld [vmem:[%s288_s1] sm:$0xff]  ;;  %v27_v6 = vld [vmem:[%s289_s2 + $0x8] sm:$0xff] }
   0x3   :  { %174 = vmatmul.msk.f32.vlgmr.msra.gmra.mxu2 %vm50_vm0, %v22_v1  ;;  %176 = vmatmul.msk.f32.vlgmr.msra.gmra.mxu3 %vm50_vm0, %v24_v2 }
   0x4   :  { %78 = vmatpush.msra.mxu0 %v25_v0 }
   0x5   :  { %10 = vsyncpa [#allocation3], 0  ;;  %47 = vperm.xlu0 %182, %v29_v3   ;;  %173 = vmatmul.msk.f32.vlgmr.msra.gmra.mxu0 %vm50_vm0, %v21_v4  ;;  %v23_v7 = vld [vmem:[%s288_s1 + $0x10] sm:$0xff]  ;;  %v26_v9 = vld [vmem:[%s289_s2] sm:$0xff]  ;;  %vm103_vm1 = vcmask 261120   ;;  %s164_s14 = sshll.u32 %s292_s5, 4  ;;  %s165_s14 = int_to_ptr.hbm [resolvable:$true] %s164_s14 }
   0x6   :  { %183 = vset.pattern.permute.xlu1 %v215_v5  ;;  %184 = vset.pattern.permute.xlu2 %v215_v5  ;;  %v28_v8 = vld [vmem:[%s289_s2 + $0x10] sm:$0xff]  ;;  %v97_v10 = vld [vmem:[%s291_s4] sm:$0x3] }
   0x7   :  { %37 = vperm.xlu1 %183, %v27_v6   ;;  %100 = vperm.xlu2 %184, %v97_v10   ;;  %v96_v27 = vld [vmem:[%s290_s3] sm:$0x3]  ;;  %s216_s3 = smov [#allocation2]  }
   0x8   :  { %s162_s4 = sshll.u32 %s216_s3, 4  ;;  %s163_s4 = int_to_ptr.vmem [resolvable:$true] %s162_s4 }
   0xb   :  { %175 = vmatmul.msk.f32.gmra.mxu2 %vm50_vm0, %v23_v7 }
   0xd   :  { %42 = vperm.xlu0 %182, %v28_v8  }
   0xf   :  { %32 = vperm.xlu1 %183, %v26_v9  }
  0x61   :  { %v101_v28 = vpop.permute.xlu2 %100 }
  0x77   :  { %v48_v11 = vpop.permute.xlu0 %47 }
  0x79   :  { %v38_v12 = vpop.permute.xlu1 %37 }
  0x7f   :  { %v43_v17 = vpop.permute.xlu0 %42 }
  0x81   :  { %v33_v18 = vpop.permute.xlu1 %32 }
  0x82   :  { %v80_v19 = vpop.f32.mrf.mxu0 }
  0x83   :  { %v81_v23 = vadd.f32 %v80_v19, %v33_v18 }
  0x85   :  { %v92_v26 = vmax.f32 %v81_v23, 0.0 }
  0x86   :  { %v83_v13 = vpop.f32.mrf.mxu2  ;;  %v89_v14 = vpop.f32.mrf.mxu3 }
  0x87   :  { %v90_v15 = vadd.f32 %v89_v14, %v48_v11  ;;  %v84_v21 = vadd.f32 %v83_v13, %v38_v12 }
  0x89   :  { %v95_v16 = vmax.f32 %v90_v15, 0.0  ;;  %v93_v25 = vmax.f32 %v84_v21, 0.0 }
  0x8b   :  { %119 = vmatpush.msra.mxu1 %v95_v16 }
  0x8e   :  { %v86_v20 = vpop.f32.mrf.mxu2 }
  0x8f   :  { %v87_v22 = vadd.f32 %v86_v20, %v43_v17 }
  0x91   :  { %v94_v24 = vmax.f32 %v87_v22, 0.0 }
  0x93   :  { %120 = vmatpush.msra.mxu1 %v94_v24 }
  0x95   :  { %121 = vmatpush.msra.mxu1 %v93_v25 }
  0x97   :  { %122 = vmatpush.msra.mxu1 %v92_v26 }
  0x98   :  { %177 = vmatmul.msk.f32.vlgmr.msra.gmra.mxu1 %vm103_vm1, %v96_v27 }
 0x115   :  { %v124_v29 = vpop.f32.mrf.mxu1 }
 0x116   :  { %v125_v30 = vadd.f32 %v124_v29, %v101_v28 }
 0x118   :  { %v128_v31 = vrot.slane %v125_v30, 1 }
 0x11a   :  { %v130_v32 = vsub.f32 %v125_v30, %v128_v31 }
 0x11c   :  { %v131_v33 = vand.u32 2147483647, %v130_v32  ;;  %vm151_vm6 = vcmp.ge.f32.partialorder %v130_v32, 0.0 }
 0x11e   :  { %v132_v34 = vsub.f32 0.0, %v131_v33 }
 0x120   :  { %v133_v35 = vmul.f32 1.442695, %v132_v34 }
 0x122   :  { %185 = vpow2.f32 %v133_v35 }
 0x128   :  { %v186_v36 = vpop.eup %185 }
 0x129   :  { %v135_v37 = vadd.f32 1.0, %v186_v36 }
 0x12b   :  { %187 = vrcp.f32 %v135_v37  ;;  %v147_v41 = vand.u32 2147483648, %v135_v37  ;;  %v145_v43 = vand.u32 2147483647, %v135_v37  ;;  %vm141_vm3 = vweird.f32 %v135_v37 }
 0x12d   :  { %v148_v45 = vor.u32 1.1754944e-38, %v147_v41  ;;  %vm146_vm5 = vcmp.eq.f32.partialorder %v145_v43, 8.507059e+37 }
 0x131   :  { %v188_v38 = vpop.eup %187 }
 0x132   :  { %v137_v39 = vmul.f32 %v188_v38, %v135_v37  ;;  %vm142_vm2 = vweird.f32 %v188_v38 }
 0x133   :  { %vm143_vm4 = vmor %vm141_vm3, %vm142_vm2 }
 0x134   :  { %v138_v40 = vsub.f32 1.0, %v137_v39 }
 0x136   :  { %v139_v42 = vmul.f32 %v188_v38, %v138_v40 }
 0x138   :  { %v140_v44 = vadd.f32 %v188_v38, %v139_v42 }
 0x13a   :  { %v144_v46 = vsel %vm143_vm4, %v188_v38, %v140_v44 }
 0x13b   :  { %v149_v47 = vsel %vm146_vm5, %v148_v45, %v144_v46 }
 0x13c   :  { %v152_v48 = vsub.f32 1.0, %v149_v47 }
 0x13e   :  { %v153_v49 = vsel %vm151_vm6, %v149_v47, %v152_v48 }
 0x13f   :  { %v154_v50 = vsub.f32 1.0, %v153_v49  ;;  %155 = vst [vmem:[#allocation2] sm:$0x1] %v153_v49 }
 0x141   :  { %156 = vst [vmem:[#allocation2 + $0x1] sm:$0x1] %v154_v50 }
 0x142   :  { %167 = dma.vmem_to_hbm [thread:$0]  %s163_s4, 32, %s165_s14, [#allocation3]  }
 0x143   :  { %213 = dma.done.wait [#allocation3], 32  }
 0x144   :  { %214 = vsyncadd [#allocation3], 4294967264 }
 0x145   :  { %172 = vsyncpa [#allocation3], 1 }

</bundles_post_ra>
